<compile_context>
chip_gen: v5e
topology: v5e:2x2
jax: 0.10.0
libtpu: 0.0.40
codegen_flags: <defaults>
</compile_context>

<pallas_src>
import functools
import math

import jax
import jax.numpy as jnp
from jax.experimental import pallas as pl
from jax.experimental.pallas import tpu as pltpu

LAYER_NORM_EPS = 1e-12
MXU_DTYPE = jnp.bfloat16             # MXU operands; accumulation stays f32
VMEM_LIMIT_BYTES = 48 * 1024 * 1024  # headroom under v7x's 64 MiB physical VMEM


def _pick_l_tile(L, max_tile):
    """Largest tile t <= max_tile with t % 8 == 0 and L % t == 0; else whole L."""
    if L <= max_tile:
        return L
    for t in range(max_tile, 7, -1):
        if t % 8 == 0 and L % t == 0:
            return t
    return L  # ragged L: fall back to a single tile spanning all of L


# ----------------------------------------------------------------------------
# Kernel 1: fused Q/K/V projection — one MXU stream per row tile
# ----------------------------------------------------------------------------
def _qkv_kernel(x_ref, w_ref, b_ref, q_ref, k_ref, v_ref, *, D):
    x = x_ref[0].astype(MXU_DTYPE)                               # (tl, D)
    y = jnp.dot(x, w_ref[...], preferred_element_type=jnp.float32) + b_ref[...]
    q_ref[0] = y[:, :D].astype(q_ref.dtype)
    k_ref[0] = y[:, D:2 * D].astype(k_ref.dtype)
    v_ref[0] = y[:, 2 * D:].astype(v_ref.dtype)


def qkv_projection(x, wqkv_bf16, bqkv_f32, *, max_tile_rows=512):
    """x: [B, L, D]; wqkv_bf16: [D, 3D] bf16; bqkv_f32: [1, 3D] f32.
    Returns bf16 q, k, v, each [B, L, D]."""
    B, L, D = x.shape
    tl = _pick_l_tile(L, max_tile_rows)
    grid = (B, L // tl)

    row_spec = pl.BlockSpec((1, tl, D), lambda b, i: (b, i, 0))
    out_sds = jax.ShapeDtypeStruct((B, L, D), MXU_DTYPE)

    return pl.pallas_call(
        functools.partial(_qkv_kernel, D=D),
        out_shape=(out_sds, out_sds, out_sds),
        grid_spec=pltpu.PrefetchScalarGridSpec(
            num_scalar_prefetch=0,
            grid=grid,
            in_specs=[row_spec,
                      pl.BlockSpec((D, 3 * D), lambda b, i: (0, 0)),  # resident
                      pl.BlockSpec((1, 3 * D), lambda b, i: (0, 0))],
            out_specs=(row_spec, row_spec, row_spec),
        ),
        compiler_params=pltpu.CompilerParams(
            dimension_semantics=("parallel", "parallel"),
            vmem_limit_bytes=VMEM_LIMIT_BYTES),
    )(x, wqkv_bf16, bqkv_f32)


# ----------------------------------------------------------------------------
# Kernel 2: multi-head attention + BertSelfOutput (dense + residual + LayerNorm)
# ----------------------------------------------------------------------------
def _attn_out_kernel(x_ref, q_ref, k_ref, v_ref, m_ref, wo_ref, bo_ref,
                     g_ref, beta_ref, o_ref, *, num_heads):
    # Additive mask from the per-key validity vector, formed in-kernel (f32).
    neg = (1.0 - m_ref[0]) * -10000.0                            # (1, L)
    q = q_ref[0]                                                 # (tq, D) bf16, 1/sqrt(dh) pre-folded
    k = k_ref[0]                                                 # (L,  D) bf16
    v = v_ref[0]                                                 # (L,  D) bf16
    D = q.shape[-1]
    dh = D // num_heads

    ctx_parts = []
    for h in range(num_heads):                                   # static head loop
        sl = slice(h * dh, (h + 1) * dh)
        # scores = q_h @ k_h^T (contract head dim on the MXU, f32 accumulate)
        s = jax.lax.dot_general(q[:, sl], k[:, sl], (((1,), (1,)), ((), ())),
                                preferred_element_type=jnp.float32)   # (tq, L)
        s = s + neg
        # numerically-stable softmax; attention-probs dropout is identity (eval)
        s = s - jnp.max(s, axis=-1, keepdims=True)
        p = jnp.exp(s)
        denom = jnp.sum(p, axis=-1, keepdims=True)               # (tq, 1)
        pv = jnp.dot(p.astype(MXU_DTYPE), v[:, sl],
                     preferred_element_type=jnp.float32)         # (tq, dh)
        # normalize AFTER PV: L/dh x fewer multiplies, reciprocal on the EUP
        ctx_parts.append(pv * pl.reciprocal(denom, approx=True))
    ctx = jnp.concatenate(ctx_parts, axis=-1)                    # (tq, D) f32

    # BertSelfOutput: dense + (dropout = identity) + residual + TF LayerNorm.
    y = jnp.dot(ctx.astype(MXU_DTYPE), wo_ref[...],
                preferred_element_type=jnp.float32)
    y = y + bo_ref[...] + x_ref[0].astype(jnp.float32)
    u = jnp.mean(y, axis=-1, keepdims=True)
    var = jnp.maximum(jnp.mean(y * y, axis=-1, keepdims=True) - u * u, 0.0)
    y = (y - u) * jax.lax.rsqrt(var + LAYER_NORM_EPS)
    o_ref[0] = (g_ref[...] * y + beta_ref[...]).astype(o_ref.dtype)


def attention_output(x, q, k, v, key_mask, wo_bf16, bo, gamma, beta,
                     num_heads, *, max_q_tile=256):
    """x (residual): [B, L, D]; q/k/v: bf16 [B, L, D]; key_mask: [B, 1, L] f32."""
    B, L, D = x.shape
    tq = _pick_l_tile(L, max_q_tile)
    grid = (B, L // tq)

    row_spec = pl.BlockSpec((1, tq, D), lambda b, i: (b, i, 0))
    kv_spec = pl.BlockSpec((1, L, D), lambda b, i: (b, 0, 0))
    m_spec = pl.BlockSpec((1, 1, L), lambda b, i: (b, 0, 0))
    vec_spec = pl.BlockSpec((1, D), lambda b, i: (0, 0))

    return pl.pallas_call(
        functools.partial(_attn_out_kernel, num_heads=num_heads),
        out_shape=jax.ShapeDtypeStruct((B, L, D), x.dtype),
        grid_spec=pltpu.PrefetchScalarGridSpec(
            num_scalar_prefetch=0,
            grid=grid,
            in_specs=[row_spec,                                   # residual x
                      row_spec,                                   # q tile
                      kv_spec, kv_spec,                           # k, v (per-batch)
                      m_spec,                                     # key validity
                      pl.BlockSpec((D, D), lambda b, i: (0, 0)),  # Wo resident
                      vec_spec, vec_spec, vec_spec],              # bo, gamma, beta
            out_specs=row_spec,                                   # lane-dense (tq, D)
        ),
        compiler_params=pltpu.CompilerParams(
            dimension_semantics=("parallel", "parallel"),
            vmem_limit_bytes=VMEM_LIMIT_BYTES),
    )(x, q, k, v, key_mask, wo_bf16, bo, gamma, beta)


# ----------------------------------------------------------------------------
# BertAttention forward
# ----------------------------------------------------------------------------
def bert_attention(input_tensor, key_valid_mask, params, *, num_heads,
                   qkv_tile_rows=512, attn_q_tile=256):
    """input_tensor: [B, L, D]; key_valid_mask: [B, L] (1 = attend, 0 = mask).

    TODO(synk): general per-query [B, Lq, L] masks and RelativeTemEmbedding
    (rpe_q / rpe_k contextual bias, used only when config.enable_relative=True)
    are not implemented; only the key-broadcast mask path is supported.
    """
    B, L, D = input_tensor.shape
    assert D % num_heads == 0
    dh = D // num_heads
    scale = 1.0 / math.sqrt(dh)

    # Pre-cast weights to bf16 ONCE outside the kernels; fold 1/sqrt(dh) into
    # the Q projection so the attention kernel never scales the score matrix.
    wqkv = jnp.concatenate(
        [params["wq"] * scale, params["wk"], params["wv"]], axis=1).astype(MXU_DTYPE)
    bqkv = jnp.concatenate(
        [params["bq"] * scale, params["bk"], params["bv"]]).reshape(1, 3 * D)
    wo = params["wo"].astype(MXU_DTYPE)

    q, k, v = qkv_projection(input_tensor, wqkv, bqkv, max_tile_rows=qkv_tile_rows)

    key_mask = key_valid_mask.astype(jnp.float32).reshape(B, 1, L)
    out = attention_output(
        input_tensor, q, k, v, key_mask, wo,
        params["bo"].reshape(1, D), params["gamma"].reshape(1, D),
        params["beta"].reshape(1, D), num_heads, max_q_tile=attn_q_tile)
    return out


# ----------------------------------------------------------------------------
# Pure-JAX reference (mirrors the PyTorch forward in f32)
# ----------------------------------------------------------------------------
def reference(x, key_valid, params, num_heads):
    B, L, D = x.shape
    dh = D // num_heads

    def lin(t, w, b):
        return jnp.einsum("bld,dh->blh", t, w) + b

    q = lin(x, params["wq"], params["bq"])
    k = lin(x, params["wk"], params["bk"])
    v = lin(x, params["wv"], params["bv"])

    def split(t):
        return t.reshape(B, L, num_heads, dh).transpose(0, 2, 1, 3)

    ql, kl, vl = split(q), split(k), split(v)
    scores = jnp.einsum("bhqd,bhkd->bhqk", ql, kl) / math.sqrt(dh)
    add_mask = ((1.0 - key_valid) * -10000.0)[:, None, None, :]    # [B,1,1,L]
    probs = jax.nn.softmax(scores + add_mask, axis=-1)
    ctx = jnp.einsum("bhqk,bhkd->bhqd", probs, vl)
    ctx = ctx.transpose(0, 2, 1, 3).reshape(B, L, D)

    y = jnp.einsum("bld,dh->blh", ctx, params["wo"]) + params["bo"]
    y = y + x
    u = y.mean(-1, keepdims=True)
    s = ((y - u) ** 2).mean(-1, keepdims=True)
    y = (y - u) / jnp.sqrt(s + LAYER_NORM_EPS)
    return params["gamma"] * y + params["beta"]


if __name__ == "__main__":
    B, L, D, H = 2, 16, 128, 4   # batch, seq, hidden, heads (head_dim = 32)

    key = jax.random.PRNGKey(0)
    ks = jax.random.split(key, 10)

    x = jax.random.normal(ks[0], (B, L, D), dtype=jnp.float32)
    # per-batch valid key lengths so the mask path is exercised
    lengths = jnp.array([L, L - 4], dtype=jnp.int32)
    key_valid = (jnp.arange(L)[None, :] < lengths[:, None]).astype(jnp.float32)  # [B, L]

    def winit(k):
        return jax.random.normal(k, (D, D), dtype=jnp.float32) * 0.02

    params = dict(
        wq=winit(ks[1]), wk=winit(ks[2]), wv=winit(ks[3]), wo=winit(ks[4]),
        bq=jax.random.normal(ks[5], (D,), jnp.float32) * 0.02,
        bk=jax.random.normal(ks[6], (D,), jnp.float32) * 0.02,
        bv=jax.random.normal(ks[7], (D,), jnp.float32) * 0.02,
        bo=jax.random.normal(ks[8], (D,), jnp.float32) * 0.02,
        gamma=jnp.ones((D,), jnp.float32),
        beta=jnp.zeros((D,), jnp.float32),
    )

    out = bert_attention(x, key_valid, params, num_heads=H)
    out = jax.block_until_ready(out)

    ref = reference(x, key_valid, params, H)
    assert out.shape == (B, L, D)
    max_err = float(jnp.max(jnp.abs(out - ref)))
    # bf16 MXU operands / bf16 q,k,v intermediates with f32 accumulation
    # -> small deviation vs the f32 reference
    assert jnp.allclose(out, ref, atol=2e-2, rtol=2e-2), \
        f"mismatch vs reference, max |err| = {max_err}"

    print("KERNEL_OK")
</pallas_src>

<mosaic_0001>
module attributes {stable_mosaic.version = 11 : i64} {
  func.func @_qkv_kernel(%arg0: i32, %arg1: i32, %arg2: memref<1x16x128xf32, #tpu.memory_space<vmem>>, %arg3: memref<128x384xbf16, #tpu.memory_space<vmem>>, %arg4: memref<1x384xf32, #tpu.memory_space<vmem>>, %arg5: memref<1x16x128xbf16, #tpu.memory_space<vmem>>, %arg6: memref<1x16x128xbf16, #tpu.memory_space<vmem>>, %arg7: memref<1x16x128xbf16, #tpu.memory_space<vmem>>) attributes {dimension_semantics = [#tpu.dimension_semantics<parallel>, #tpu.dimension_semantics<parallel>], iteration_bounds = array<i64: 2, 1>, scalar_prefetch = 0 : i64, scratch_operands = 0 : i64, tpu.core_type = #tpu.core_type<tc>, window_params = [{transform_indices = @transform_0, window_bounds = array<i64: 1, 16, 128>}, {pipeline_mode = #tpu.pipeline_mode<synchronous>, transform_indices = @transform_1, window_bounds = array<i64: 128, 384>}, {pipeline_mode = #tpu.pipeline_mode<synchronous>, transform_indices = @transform_2, window_bounds = array<i64: 1, 384>}, {transform_indices = @transform_3, window_bounds = array<i64: 1, 16, 128>}, {transform_indices = @transform_4, window_bounds = array<i64: 1, 16, 128>}, {transform_indices = @transform_5, window_bounds = array<i64: 1, 16, 128>}]} {
    %c0 = arith.constant 0 : index
    %c0_0 = arith.constant 0 : index
    %c0_1 = arith.constant 0 : index
    %0 = vector.load %arg2[%c0, %c0_0, %c0_1] : memref<1x16x128xf32, #tpu.memory_space<vmem>>, vector<1x16x128xf32>
    %1 = vector.shape_cast %0 : vector<1x16x128xf32> to vector<16x128xf32>
    %2 = arith.truncf %1 : vector<16x128xf32> to vector<16x128xbf16>
    %c0_2 = arith.constant 0 : index
    %c0_3 = arith.constant 0 : index
    %3 = vector.load %arg3[%c0_2, %c0_3] : memref<128x384xbf16, #tpu.memory_space<vmem>>, vector<128x384xbf16>
    %cst = arith.constant dense<0.000000e+00> : vector<16x384xf32>
    %4 = tpu.matmul %2, %3, %cst {dimension_numbers = #tpu.dot_dimension_numbers<[1], [0], [0], [1], [0, 0, 1, 1], [], []>} : vector<16x128xbf16>, vector<128x384xbf16>, vector<16x384xf32> -> vector<16x384xf32>
    %c0_4 = arith.constant 0 : index
    %c0_5 = arith.constant 0 : index
    %5 = vector.load %arg4[%c0_4, %c0_5] : memref<1x384xf32, #tpu.memory_space<vmem>>, vector<1x384xf32>
    %6 = vector.broadcast %5 : vector<1x384xf32> to vector<16x384xf32>
    %7 = arith.addf %4, %6 : vector<16x384xf32>
    %8 = vector.extract_strided_slice %7 {offsets = [0, 0], sizes = [16, 128], strides = [1, 1]} : vector<16x384xf32> to vector<16x128xf32>
    %9 = arith.truncf %8 : vector<16x128xf32> to vector<16x128xbf16>
    %c0_6 = arith.constant 0 : index
    %c0_7 = arith.constant 0 : index
    %c0_8 = arith.constant 0 : index
    %10 = vector.load %arg5[%c0_6, %c0_7, %c0_8] : memref<1x16x128xbf16, #tpu.memory_space<vmem>>, vector<1x16x128xbf16>
    %11 = vector.shape_cast %10 : vector<1x16x128xbf16> to vector<16x128xbf16>
    %12 = vector.shape_cast %9 : vector<16x128xbf16> to vector<1x16x128xbf16>
    tpu.vector_store %arg5[%c0_6, %c0_7, %c0_8], %12 {strides = array<i32>} : memref<1x16x128xbf16, #tpu.memory_space<vmem>>, vector<1x16x128xbf16>,
    %13 = vector.extract_strided_slice %7 {offsets = [0, 128], sizes = [16, 128], strides = [1, 1]} : vector<16x384xf32> to vector<16x128xf32>
    %14 = arith.truncf %13 : vector<16x128xf32> to vector<16x128xbf16>
    %c0_9 = arith.constant 0 : index
    %c0_10 = arith.constant 0 : index
    %c0_11 = arith.constant 0 : index
    %15 = vector.load %arg6[%c0_9, %c0_10, %c0_11] : memref<1x16x128xbf16, #tpu.memory_space<vmem>>, vector<1x16x128xbf16>
    %16 = vector.shape_cast %15 : vector<1x16x128xbf16> to vector<16x128xbf16>
    %17 = vector.shape_cast %14 : vector<16x128xbf16> to vector<1x16x128xbf16>
    tpu.vector_store %arg6[%c0_9, %c0_10, %c0_11], %17 {strides = array<i32>} : memref<1x16x128xbf16, #tpu.memory_space<vmem>>, vector<1x16x128xbf16>,
    %18 = vector.extract_strided_slice %7 {offsets = [0, 256], sizes = [16, 128], strides = [1, 1]} : vector<16x384xf32> to vector<16x128xf32>
    %19 = arith.truncf %18 : vector<16x128xf32> to vector<16x128xbf16>
    %c0_12 = arith.constant 0 : index
    %c0_13 = arith.constant 0 : index
    %c0_14 = arith.constant 0 : index
    %20 = vector.load %arg7[%c0_12, %c0_13, %c0_14] : memref<1x16x128xbf16, #tpu.memory_space<vmem>>, vector<1x16x128xbf16>
    %21 = vector.shape_cast %20 : vector<1x16x128xbf16> to vector<16x128xbf16>
    %22 = vector.shape_cast %19 : vector<16x128xbf16> to vector<1x16x128xbf16>
    tpu.vector_store %arg7[%c0_12, %c0_13, %c0_14], %22 {strides = array<i32>} : memref<1x16x128xbf16, #tpu.memory_space<vmem>>, vector<1x16x128xbf16>,
    return
  }
  func.func @transform_0(%arg0: i32, %arg1: i32) -> (i32, i32, i32) {
    %c0_i32 = arith.constant 0 : i32
    %c0_i32_0 = arith.constant 0 : i32
    return %arg0, %arg1, %c0_i32 : i32, i32, i32
  }
  func.func @transform_1(%arg0: i32, %arg1: i32) -> (i32, i32) {
    %c0_i32 = arith.constant 0 : i32
    %c0_i32_0 = arith.constant 0 : i32
    %c0_i32_1 = arith.constant 0 : i32
    return %c0_i32, %c0_i32_0 : i32, i32
  }
  func.func @transform_2(%arg0: i32, %arg1: i32) -> (i32, i32) {
    %c0_i32 = arith.constant 0 : i32
    %c0_i32_0 = arith.constant 0 : i32
    %c0_i32_1 = arith.constant 0 : i32
    return %c0_i32, %c0_i32_0 : i32, i32
  }
  func.func @transform_3(%arg0: i32, %arg1: i32) -> (i32, i32, i32) {
    %c0_i32 = arith.constant 0 : i32
    %c0_i32_0 = arith.constant 0 : i32
    return %arg0, %arg1, %c0_i32 : i32, i32, i32
  }
  func.func @transform_4(%arg0: i32, %arg1: i32) -> (i32, i32, i32) {
    %c0_i32 = arith.constant 0 : i32
    %c0_i32_0 = arith.constant 0 : i32
    return %arg0, %arg1, %c0_i32 : i32, i32, i32
  }
  func.func @transform_5(%arg0: i32, %arg1: i32) -> (i32, i32, i32) {
    %c0_i32 = arith.constant 0 : i32
    %c0_i32_0 = arith.constant 0 : i32
    return %arg0, %arg1, %c0_i32 : i32, i32, i32
  }
}

</mosaic_0001>

<bundles_post_ra>
// kernel: tpu_custom_call.1
= control target key start
LH: loop header
LB: loop body
LE: loop exit
PB: predicated region body
PF: predicated region fallthrough
CT: control target
= control target key end

     0   :  { %s1566_s0 = inlined_call_operand.hbm [shape: f32[2,16,128], index: 0, kind: input, shape index: {}]   ;;  %s1567_s1 = inlined_call_operand.hbm [shape: bf16[128,384], index: 1, kind: input, shape index: {}]   ;;  %s1568_s2 = inlined_call_operand.hbm [shape: f32[1,384], index: 2, kind: input, shape index: {}]   ;;  %s1569_s3 = inlined_call_operand.hbm [shape: bf16[2,16,128], index: 3, kind: output, shape index: {0}]   ;;  %s1570_s4 = inlined_call_operand.hbm [shape: bf16[2,16,128], index: 4, kind: output, shape index: {1}]   ;;  %s1571_s5 = inlined_call_operand.hbm [shape: bf16[2,16,128], index: 5, kind: output, shape index: {2}]  }
   0x1   :  { %1575 = sst [smem:[#allocation17_spill]] %s1567_s1 }
   0x2   :  { %1576 = sst [smem:[#allocation18_spill]] %s1568_s2 }
   0x3   :  { %11 = vsyncpa [#allocation3], 0 }
   0x4   :  { %13 = vsyncpa [#allocation3 + $0x1], 0 }
   0x5   :  { %14 = vsyncpa [#allocation6], 0 }
   0x6   :  { %15 = vsyncpa [#allocation4], 0 }
   0x7   :  { %17 = vsyncpa [#allocation4 + $0x1], 0 }
   0x8   :  { %18 = vsyncpa [#allocation10], 0 }
   0x9   :  { %20 = vsyncpa [#allocation10 + $0x1], 0  ;;  %s1327_s18 = smov 0   ;;  %s1329_s19 = smov 0  }
   0xa   :  { %s1331_s20 = smov 0   ;;  %s1333_s21 = smov 0  }
   0xb   :  { %s1335_s22 = smov 0   ;;  %s1337_s23 = smov 0  }
   0xc LB: > { %s1358_s24 = sadd.s32 4294967295, %s1287_s23   ;;  %s1572_s25 = sadd.s32 4294967294, %s1287_s23   ;;  %s1287_s23 = sphi %s1337_s23, %s26_s23   ;;  %s1283_s22 = sphi %s1335_s22, %s1592_s22   ;;  %s1279_s21 = sphi %s1333_s21, %s1591_s21   ;;  %s1275_s20 = sphi %s1331_s20, %s1590_s20   ;;  %s1271_s19 = sphi %s1329_s19, %s1589_s19   ;;  %s1267_s18 = sphi %s1327_s18, %s1588_s18  }
   0xd   : > { %p60_p0 = scmp.ne.s32.totalorder %s1271_s19, %s1267_s18  ;;  %p61_p1 = scmp.eq.s32.totalorder %s1358_s24, 0 }
   0xe   : > { %p128_p2 = scmp.eq.s32.totalorder %s1358_s24, 1  ;;  %p134_p3 = scmp.eq.s32.totalorder %s1572_s25, 1 }
   0xf   : > { %p1369_p4 = por %p61_p1, %p60_p0  ;;  %p788_p5 = scmp.ge.s32.totalorder %s1287_s23, 1 }
  0x10   : > { %p1374_p6 = por %p134_p3, %p60_p0  ;;  %p197_p7 = scmp.lt.s32.totalorder %s1287_s23, 3 }
  0x11   : > { %s1579_s1 = sld [smem:[#allocation17_spill]]  ;;  %s1289_s7 = smov [#allocation5]  }
  0x12   : > { %p1382_p8 = pnand %p788_p5, %p197_p7  ;;  %s210_s8 = sshll.u32 %s1289_s7, 4  ;;  %s211_s8 = int_to_ptr.vmem [resolvable:$true] %s210_s8 }
  0x13   : > { %p791_p11 = scmp.ge.s32.totalorder %s1287_s23, 2  ;;  %s1581_s2 = sld [smem:[#allocation18_spill]] }
  0x14   : > { %p968_p9 = pneg %p1382_p8  ;;  %s1290_s12 = smov 192  }
  0x15   : > { %s1291_s13 = smov 12   ;;  %s1292_s14 = smov [#allocation7]  }
  0x16   : > { %p969_p10 = pnand %p968_p9, %p61_p1  ;;  %s225_s15 = sshll.u32 %s1292_s14, 4  ;;  %s226_s15 = int_to_ptr.vmem [resolvable:$true] %s225_s15 }
  0x17   : > { %s208_s30 = sshll.u32 %s1579_s1, 4  ;;  %s38_s16 = sadd.s32 1, %s1283_s22  ;;  %s209_s30 = int_to_ptr.hbm [resolvable:$true] %s208_s30 }
  0x18   : > { %971 = dma.hbm_to_vmem [thread:$0]  (!%p969_p10), %s209_s30, 3072, %s211_s8, [#allocation6], %s1290_s12, %s1290_s12, %s1291_s13  }
  0x19   : > { %s223_s11 = sshll.u32 %s1581_s2, 4  ;;  %s47_s17 = sadd.s32 1, %s1275_s20  ;;  %s224_s11 = int_to_ptr.hbm [resolvable:$true] %s223_s11 }
  0x1a   : > { %974 = dma.hbm_to_vmem [thread:$0]  (!%p969_p10), %s224_s11, 48, %s226_s15, [#allocation6]  }
  0x1b   : > { %p40_p12 = scmp.ge.s32.totalorder %s38_s16, 2  ;;  %p54_p13 = scmp.ne.s32.totalorder %s1275_s20, %s1271_s19 }
  0x1c   : > { %p55_p0 = scmp.eq.s32.totalorder %s1287_s23, 0  ;;  %p991_p3 = scmp.lt.s32.totalorder %s1287_s23, 2 }
  0x1d   : > { %s1594_s16 = smov (%p40_p12, %s38_s16), 0  ;;  %p1408_p7 = por %p128_p2, %p54_p13 }
  0x1e   : > { %1582 = sst [smem:[#allocation16_spill]] %s1594_s16  ;;  %p1402_p5 = por %p55_p0, %p54_p13 }
  0x1f   : > { %s42_s30 = ssub.s32 %s1283_s22, %s1594_s16  ;;  %s236_s7 = sand.u32 1, %s1275_s20  }
  0x20   : > { %p45_p9 = scmp.eq.s32.totalorder %s42_s30, 0  ;;  %s792_s8 = sshll.u32 %s236_s7, 4 }
  0x21   : > { %s909_s9 = sshll.u32 %s1283_s22, 4  ;;  %s240_s15 = scalar_lea.vmem [#allocation2], %s792_s8 }
  0x22   : > { %s1417_s10 = scalar_select %p45_p9, %s1275_s20, %s47_s17  }
  0x23   : > { %s247_s13 = scalar_lea.hbm %s1566_s0, %s909_s9  ;;  %s250_s25 = sshll.u32 %s240_s15, 4  ;;  %s251_s25 = int_to_ptr.vmem [resolvable:$true] %s250_s25 }
  0x24   : > { %s248_s14 = sshll.u32 %s247_s13, 4  ;;  %p976_p2 = pnand %p991_p3, %p1402_p5  ;;  %s249_s14 = int_to_ptr.hbm [resolvable:$true] %s248_s14 }
  0x25   : > { %s237_s1 = scalar_lea.sflag [#allocation3], %s236_s7  ;;  %s1293_s2 = smov 128  }
  0x26   : > { %s1294_s16 = smov 8   ;;  %262 = sbr.rel (%p1382_p8) target bundleno = 253 (0xfd), region = 32 }
  0x27   : > { %978 = dma.hbm_to_vmem [thread:$0]  (!%p976_p2), %s249_s14, 256, %s251_s25, %s237_s1, %s1293_s2, %s1293_s2, %s1294_s16  }
  0x28   : > { %s1429_s17 = sand.u32 (!%p1382_p8), 1, %s1271_s19  }
  0x29   : > { %s796_s30 = sshll.u32 (!%p1382_p8), %s1429_s17, 4  ;;  %s265_s8 = scalar_lea.sflag (!%p1382_p8), [#allocation3], %s1429_s17 }
  0x2a   : > { %s1433_s9 = scalar_lea.vmem (!%p1382_p8), [#allocation2], %s796_s30 }
  0x2b   : > { %1250 = dma.done.wait (%p1369_p4), %s265_s8, 256  }
  0x2c   : > { %1252 = vsyncadd (%p1369_p4), %s265_s8, 4294967040 }
  0x2d   : > { %1254 = dma.done.wait (%p61_p1), [#allocation6], 3120  }
  0x2e   : > { %1256 = vsyncadd (%p61_p1), [#allocation6], 4294964176  ;;  %v888_v0 = vld [vmem:[#allocation5 + $0xa8] sm:$0xf]  ;;  %v932_v1 = vld [vmem:[#allocation5 + $0xb0] sm:$0xf0] }
  0x2f   : > { %v931_v2 = vld [vmem:[#allocation5 + $0xac] sm:$0xf]  ;;  %v889_v3 = vor.u32 %v932_v1, %v888_v0  ;;  %v890_v4 = vld [vmem:[#allocation5 + $0xb4] sm:$0xf0]  ;;  %v896_v5 = vld [vmem:[#allocation5 + $0xb0] sm:$0xf] }
  0x30   : > { %v933_v6 = vld [vmem:[#allocation5 + $0xb8] sm:$0xf0]  ;;  %v893_v7 = vor.u32 %v931_v2, %v890_v4  ;;  %v876_v9 = vld [vmem:[#allocation5 + $0x90] sm:$0xf]  ;;  %v928_v11 = vld [vmem:[#allocation5 + $0x94] sm:$0xf] }
  0x31   : > { %v897_v8 = vor.u32 %v933_v6, %v896_v5  ;;  %v929_v10 = vld [vmem:[#allocation5 + $0x98] sm:$0xf0]  ;;  %491 = vmatpush.bf16.msra.mxu0 %v889_v3  ;;  %v878_v13 = vld [vmem:[#allocation5 + $0x9c] sm:$0xf0]  ;;  %v884_v14 = vld [vmem:[#allocation5 + $0x98] sm:$0xf] }
  0x32   : > { %v877_v12 = vor.u32 %v929_v10, %v876_v9  ;;  %v930_v15 = vld [vmem:[#allocation5 + $0xa0] sm:$0xf0]  ;;  %505 = vmatpush.bf16.msra.mxu1 %v893_v7  ;;  %v881_v16 = vor.u32 %v928_v11, %v878_v13  ;;  %v864_v18 = vld [vmem:[#allocation5 + $0x78] sm:$0xf]  ;;  %v925_v20 = vld [vmem:[#allocation5 + $0x7c] sm:$0xf] }
  0x33   : > { %519 = vmatpush.bf16.msra.mxu2 %v897_v8  ;;  %v885_v17 = vor.u32 %v930_v15, %v884_v14  ;;  %v926_v19 = vld [vmem:[#allocation5 + $0x80] sm:$0xf0]  ;;  %v866_v21 = vld [vmem:[#allocation5 + $0x84] sm:$0xf0]  ;;  %v872_v22 = vld [vmem:[#allocation5 + $0x80] sm:$0xf] }
  0x34   : > { %v927_v23 = vld [vmem:[#allocation5 + $0x88] sm:$0xf0]  ;;  %v865_v24 = vor.u32 %v926_v19, %v864_v18  ;;  %v869_v25 = vor.u32 %v925_v20, %v866_v21  ;;  %v852_v27 = vld [vmem:[#allocation5 + $0x60] sm:$0xf]  ;;  %v922_v29 = vld [vmem:[#allocation5 + $0x64] sm:$0xf] }
  0x35   : > { %492 = vmatpush.bf16.msra.mxu0 %v877_v12  ;;  %v873_v26 = vor.u32 %v927_v23, %v872_v22  ;;  %v923_v28 = vld [vmem:[#allocation5 + $0x68] sm:$0xf0]  ;;  %v854_v30 = vld [vmem:[#allocation5 + $0x6c] sm:$0xf0]  ;;  %v860_v31 = vld [vmem:[#allocation5 + $0x68] sm:$0xf] }
  0x36   : > { %506 = vmatpush.bf16.msra.mxu1 %v881_v16  ;;  %v924_v32 = vld [vmem:[#allocation5 + $0x70] sm:$0xf0]  ;;  %v853_v33 = vor.u32 %v923_v28, %v852_v27  ;;  %v857_v34 = vor.u32 %v922_v29, %v854_v30  ;;  %v840_v36 = vld [vmem:[#allocation5 + $0x48] sm:$0xf]  ;;  %v919_v38 = vld [vmem:[#allocation5 + $0x4c] sm:$0xf] }
  0x37   : > { %520 = vmatpush.bf16.msra.mxu2 %v885_v17  ;;  %v861_v35 = vor.u32 %v924_v32, %v860_v31  ;;  %v920_v37 = vld [vmem:[#allocation5 + $0x50] sm:$0xf0]  ;;  %v842_v39 = vld [vmem:[#allocation5 + $0x54] sm:$0xf0]  ;;  %v848_v40 = vld [vmem:[#allocation5 + $0x50] sm:$0xf] }
  0x38   : > { %v921_v41 = vld [vmem:[#allocation5 + $0x58] sm:$0xf0]  ;;  %v841_v42 = vor.u32 %v920_v37, %v840_v36  ;;  %v845_v43 = vor.u32 %v919_v38, %v842_v39  ;;  %v828_v45 = vld [vmem:[#allocation5 + $0x30] sm:$0xf]  ;;  %v916_v47 = vld [vmem:[#allocation5 + $0x34] sm:$0xf] }
  0x39   : > { %493 = vmatpush.bf16.msra.mxu0 %v865_v24  ;;  %v849_v44 = vor.u32 %v921_v41, %v848_v40  ;;  %v917_v46 = vld [vmem:[#allocation5 + $0x38] sm:$0xf0]  ;;  %v830_v48 = vld [vmem:[#allocation5 + $0x3c] sm:$0xf0]  ;;  %v836_v49 = vld [vmem:[#allocation5 + $0x38] sm:$0xf] }
  0x3a   : > { %507 = vmatpush.bf16.msra.mxu1 %v869_v25  ;;  %v918_v50 = vld [vmem:[#allocation5 + $0x40] sm:$0xf0]  ;;  %v829_v51 = vor.u32 %v917_v46, %v828_v45  ;;  %v833_v52 = vor.u32 %v916_v47, %v830_v48  ;;  %v816_v54 = vld [vmem:[#allocation5 + $0x18] sm:$0xf]  ;;  %v913_v56 = vld [vmem:[#allocation5 + $0x1c] sm:$0xf] }
  0x3b   : > { %521 = vmatpush.bf16.msra.mxu2 %v873_v26  ;;  %v837_v53 = vor.u32 %v918_v50, %v836_v49  ;;  %v914_v55 = vld [vmem:[#allocation5 + $0x20] sm:$0xf0]  ;;  %v818_v57 = vld [vmem:[#allocation5 + $0x24] sm:$0xf0]  ;;  %v824_v58 = vld [vmem:[#allocation5 + $0x20] sm:$0xf] }
  0x3c   : > { %v915_v59 = vld [vmem:[#allocation5 + $0x28] sm:$0xf0]  ;;  %v817_v60 = vor.u32 %v914_v55, %v816_v54  ;;  %v821_v61 = vor.u32 %v913_v56, %v818_v57  ;;  %v804_v63 = vld [vmem:[#allocation5] sm:$0xf]  ;;  %v910_v1 = vld [vmem:[#allocation5 + $0x4] sm:$0xf] }
  0x3d   : > { %494 = vmatpush.bf16.msra.mxu0 %v853_v33  ;;  %v825_v62 = vor.u32 %v915_v59, %v824_v58  ;;  %v911_v0 = vld [vmem:[#allocation5 + $0x8] sm:$0xf0]  ;;  %v806_v2 = vld [vmem:[#allocation5 + $0xc] sm:$0xf0]  ;;  %v812_v3 = vld [vmem:[#allocation5 + $0x8] sm:$0xf] }
  0x3e   : > { %508 = vmatpush.bf16.msra.mxu1 %v857_v34  ;;  %v912_v4 = vld [vmem:[#allocation5 + $0x10] sm:$0xf0]  ;;  %v805_v5 = vor.u32 %v911_v0, %v804_v63  ;;  %v321_v7 = vld [vmem:[%s1433_s9 + $0x8] sm:$0xff]  ;;  %v809_v8 = vor.u32 %v910_v1, %v806_v2  ;;  %s1446_s1 = sshll.u32 %s1429_s17, 3  ;;  %v355_v13 = vld [vmem:[#allocation7] sm:$0x7] }
  0x3f   : > { %522 = vmatpush.bf16.msra.mxu2 %v861_v35  ;;  %v320_v6 = vld [vmem:[%s1433_s9] sm:$0xff]  ;;  %v813_v9 = vor.u32 %v912_v4, %v812_v3  ;;  %s1449_s2 = sshll.u32 %s1279_s21, 3  ;;  %v357_v14 = vperm.slane %v355_v13, 0  ;;  %s301_s25 = scalar_lea.vmem [#allocation8], %s1446_s1  ;;  %v358_v15 = vperm.slane %v355_v13, 1  ;;  %v359_v24 = vperm.slane %v355_v13, 2 }
  0x40   : > { %v322_v10 = vpack.c.bf16 %v321_v7, %v320_v6  ;;  %s1452_s26 = sshll.u32 %s301_s25, 4  ;;  %s308_s6 = scalar_lea.vmem [#allocation9], %s1446_s1  ;;  %s571_s26 = int_to_ptr.vmem [resolvable:$true] %s1452_s26 }
  0x41   : > { %495 = vmatpush.bf16.msra.mxu0 %v841_v42  ;;  %s1455_s16 = sshll.u32 %s308_s6, 4  ;;  %s588_s11 = scalar_lea.hbm %s1570_s4, %s1449_s2  ;;  %s590_s16 = int_to_ptr.vmem [resolvable:$true] %s1455_s16 }
  0x42   : > { %509 = vmatpush.bf16.msra.mxu1 %v845_v43  ;;  %s550_s21 = sand.u32 1, %s1358_s24   ;;  %s569_s14 = scalar_lea.hbm %s1569_s3, %s1449_s2 }
  0x43   : > { %523 = vmatpush.bf16.msra.mxu2 %v849_v44  ;;  %s1468_s15 = sshll.u32 %s588_s11, 4  ;;  %s1470_s30 = sshll.u32 %s569_s14, 4  ;;  %s592_s15 = int_to_ptr.hbm [resolvable:$true] %s1468_s15  ;;  %s573_s30 = int_to_ptr.hbm [resolvable:$true] %s1470_s30 }
  0x44   : > { %s607_s9 = scalar_lea.hbm %s1571_s5, %s1449_s2  ;;  %s1574_s28 = scalar_lea.vmem [#allocation11], %s1446_s1 }
  0x45   : > { %496 = vmatpush.bf16.msra.mxu0 %v829_v51  ;;  %s1481_s7 = sshll.u32 %s1574_s28, 4  ;;  %s1483_s11 = sshll.u32 %s607_s9, 4  ;;  %s609_s7 = int_to_ptr.vmem [resolvable:$true] %s1481_s7  ;;  %s611_s11 = int_to_ptr.hbm [resolvable:$true] %s1483_s11 }
  0x46   : > { %510 = vmatpush.bf16.msra.mxu1 %v833_v52  ;;  %s1485_s12 = scalar_lea.sflag [#allocation10], %s550_s21  ;;  %s1155_s13 = sshra.s32 %s592_s15, 4  ;;  %s1156_s13 = int_to_ptr.hbm [resolvable:$true] %s1155_s13 }
  0x47   : > { %524 = vmatpush.bf16.msra.mxu2 %v837_v53  ;;  %s1157_s14 = scalar_lea.hbm %s1156_s13, 8  ;;  %p1162_p10 = scmp.lt.s32.totalorder %s1156_s13, %s1570_s4 }
  0x48   : > { %p1158_p1 = scmp.ne.s32.totalorder %s1156_s13, %s1157_s14 }
  0x49   : > { %497 = vmatpush.bf16.msra.mxu0 %v817_v60 }
  0x4a   : > { %511 = vmatpush.bf16.msra.mxu1 %v821_v61  ;;  %p1159_p4 = pnand %p1158_p1, %p1408_p7 }
  0x4b   : > { %525 = vmatpush.bf16.msra.mxu2 %v825_v62 }
  0x4c   : > { %p1160_p8 = pneg %p1159_p4 }
  0x4d   : > { %498 = vmatpush.bf16.msra.mxu0 %v805_v5 }
  0x4e   : > { %512 = vmatpush.bf16.msra.mxu1 %v809_v8 }
  0x4f   : > { %526 = vmatpush.bf16.msra.mxu2 %v813_v9 }
  0x50   : > { %499 = vmatmul.bf16.vlgmr.msra.gmra.mxu0 %v322_v10 }
  0x51   : > { %513 = vmatmul.bf16.vlgmr.msra.gmra.mxu1 %v322_v10 }
  0x52   : > { %527 = vmatmul.bf16.vlgmr.msra.gmra.mxu2 %v322_v10 }
  0xcd   : > { %v500_v11 = vpop.f32.mrf.mxu0 }
  0xce   : > { %v514_v12 = vpop.f32.mrf.mxu1  ;;  %v501_v18 = vadd.f32 %v500_v11, %v357_v14 }
  0xcf   : > { %v515_v21 = vadd.f32 %v514_v12, %v358_v15 }
  0xd5   : > { %v528_v16 = vpop.f32.mrf.mxu2  ;;  %v502_v17 = vpop.f32.mrf.mxu0 }
  0xd6   : > { %v503_v19 = vadd.f32 %v502_v17, %v357_v14  ;;  %v516_v20 = vpop.f32.mrf.mxu1 }
  0xd7   : > { %v517_v22 = vadd.f32 %v516_v20, %v358_v15 }
  0xd8   : > { %v940_v23 = vpack.c.bf16 %v503_v19, %v501_v18 }
  0xd9   : > { %v945_v25 = vpack.c.bf16 %v517_v22, %v515_v21 }
  0xda   : > { %941 = vst [vmem:[%s301_s25] sm:$0xff] %v940_v23  }
  0xdb   : > { %946 = vst [vmem:[%s308_s6] sm:$0xff] %v945_v25   ;;  %s1161_s6 = scalar_lea.hbm %s1570_s4, 16 }
  0xdc   : > { %p1163_p12 = scmp.lt.s32.totalorder %s1161_s6, %s1157_s14 }
  0xdd   : > { %v530_v26 = vpop.f32.mrf.mxu2 }
  0xde   : > { %p1164_p13 = por %p1163_p12, %p1162_p10 }
  0xe0   : > { %p1165_p0 = pnand %p1164_p13, %p1160_p8 }
  0xe2   : > { %1168 = shalt.err (!%p1165_p0)
}
  0xe3   : > { %s1295_s21 = smov 64   ;;  %s1296_s9 = smov 4   ;;  %v529_v27 = vadd.f32 %v528_v16, %v359_v24  ;;  %v531_v28 = vadd.f32 %v530_v26, %v359_v24 }
  0xe4   : > { %963 = dma.vmem_to_hbm [thread:$0]  (%p1408_p7), %s590_s16, 128, %s592_s15, %s1485_s12, %s1295_s21, %s1295_s21, %s1296_s9  }
  0xe5   : > { %s546_s13 = scalar_lea.sflag [#allocation4], %s1429_s17  ;;  %s1183_s14 = sshra.s32 %s573_s30, 4  ;;  %s1184_s14 = int_to_ptr.hbm [resolvable:$true] %s1183_s14 }
  0xe6   : > { %s1185_s2 = scalar_lea.hbm %s1184_s14, 8  ;;  %s1189_s24 = scalar_lea.hbm %s1569_s3, 16 }
  0xe7   : > { %p1186_p3 = scmp.ne.s32.totalorder %s1184_s14, %s1185_s2  ;;  %p1190_p2 = scmp.lt.s32.totalorder %s1184_s14, %s1569_s3 }
  0xe8   : > { %p1191_p1 = scmp.lt.s32.totalorder %s1189_s24, %s1185_s2 }
  0xe9   : > { %p1187_p5 = pnand %p1186_p3, %p1408_p7 }
  0xea   : > { %p1192_p4 = por %p1191_p1, %p1190_p2 }
  0xeb   : > { %p1188_p9 = pneg %p1187_p5 }
  0xed   : > { %p1193_p8 = pnand %p1192_p4, %p1188_p9 }
  0xef   : > { %1196 = shalt.err (!%p1193_p8)
}
  0xf0   : > { %962 = dma.vmem_to_hbm [thread:$0]  (%p1408_p7), %s571_s26, 128, %s573_s30, %s546_s13, %s1295_s21, %s1295_s21, %s1296_s9   ;;  %v950_v29 = vpack.c.bf16 %v531_v28, %v529_v27 }
  0xf1   : > { %s1585_s17 = scalar_lea.vmem [#allocation11], %s1446_s1  ;;  %s1211_s16 = sshra.s32 %s611_s11, 4  ;;  %s1212_s16 = int_to_ptr.hbm [resolvable:$true] %s1211_s16 }
  0xf2   : > { %951 = vst [vmem:[%s1585_s17] sm:$0xff] %v950_v29   ;;  %s1213_s15 = scalar_lea.hbm %s1212_s16, 8  ;;  %s1217_s2 = scalar_lea.hbm %s1571_s5, 16 }
  0xf3   : > { %p1214_p10 = scmp.ne.s32.totalorder %s1212_s16, %s1213_s15  ;;  %p1218_p0 = scmp.lt.s32.totalorder %s1212_s16, %s1571_s5 }
  0xf4   : > { %p1219_p3 = scmp.lt.s32.totalorder %s1217_s2, %s1213_s15 }
  0xf5   : > { %p1215_p12 = pnand %p1214_p10, %p1408_p7 }
  0xf6   : > { %p1220_p5 = por %p1219_p3, %p1218_p0 }
  0xf7   : > { %p1216_p13 = pneg %p1215_p12 }
  0xf9   : > { %p1221_p9 = pnand %p1220_p5, %p1216_p13 }
  0xfb   : > { %1224 = shalt.err (!%p1221_p9)
}
  0xfc   : > { %964 = dma.vmem_to_hbm [thread:$0]  (%p1408_p7), %s609_s7, 128, %s611_s11, %s1485_s12, %s1295_s21, %s1295_s21, %s1296_s9  }
  0xfd PF: > { %s625_s1 = sand.u32 1, %s1267_s18   ;;  %p980_p2 = pnand %p791_p11, %p1374_p6 }
  0xfe   : > { %s626_s26 = scalar_lea.sflag [#allocation4], %s625_s1 }
  0xff   : > { %p981_p1 = pneg %p980_p2 }
 0x101   : > { %1258 = dma.done.wait (%p981_p1), %s626_s26, 128  }
 0x102   : > { %1260 = vsyncadd (%p981_p1), %s626_s26, 4294967168  ;;  %s1586_s30 = sadd.s32 4294967294, %s1287_s23  }
 0x103   : > { %s635_s29 = sand.u32 1, %s1586_s30  }
 0x104   : > { %s636_s13 = scalar_lea.sflag [#allocation10], %s635_s29 }
 0x105   : > { %1262 = dma.done.wait (%p981_p1), %s636_s13, 256  }
 0x106   : > { %1264 = vsyncadd (%p981_p1), %s636_s13, 4294967040  ;;  %s26_s23 = sadd.s32 1, %s1287_s23   ;;  %s1587_s27 = sld [smem:[#allocation16_spill]] }
 0x107   : > { %p23_p7 = scmp.ge.s32.totalorder %s26_s23, 4   ;;  %s1588_s18 = smov %s1271_s19 }
 0x108   : > { %s1589_s19 = smov %s1275_s20  ;;  %s1590_s20 = smov %s1417_s10 }
 0x109   : > { %s1591_s21 = smov %s1283_s22  ;;  %25 = sbr.rel (!%p23_p7) target bundleno = 12 (0xc), region = 117 }
 0x10c   : > { %s1592_s22 = smov %s1587_s27 }
 0x10e   :  { %652 = vsyncpa [#allocation3], 1 }
 0x10f   :  { %654 = vsyncpa [#allocation3 + $0x1], 1 }
 0x110   :  { %655 = vsyncpa [#allocation6], 1 }
 0x111   :  { %656 = vsyncpa [#allocation4], 1 }
 0x112   :  { %658 = vsyncpa [#allocation4 + $0x1], 1 }
 0x113   :  { %659 = vsyncpa [#allocation10], 1 }
 0x114   :  { %661 = vsyncpa [#allocation10 + $0x1], 1 }

</bundles_post_ra>
